<compile_context>
chip_gen: v5e
topology: v5e:2x2
jax: 0.10.0
libtpu: 0.0.40
codegen_flags: <defaults>
</compile_context>

<pallas_src>
import jax
import jax.numpy as jnp
from jax.experimental import pallas as pl
from jax.experimental.pallas import tpu as pltpu


def _round_up(n, m):
    return ((n + m - 1) // m) * m


def mlp_kernel(x_ref, w1_ref, b1_ref, w2_ref, b2_ref, w3_ref, b3_ref, o_ref):
    # x arrives bf16 (preferred); cast is a no-op in that case.
    x = x_ref[...].astype(jnp.bfloat16)                                # (tb, in)

    # fc1 + ReLU: bf16 MXU operands, f32 accumulation, bf16 epilogue.
    h1 = jnp.dot(x, w1_ref[...], preferred_element_type=jnp.float32)
    h1 = jnp.maximum(h1.astype(jnp.bfloat16) + b1_ref[...], 0.0)       # (tb, l1) bf16

    # fc2 + ReLU.
    h2 = jnp.dot(h1, w2_ref[...], preferred_element_type=jnp.float32)
    h2 = jnp.maximum(h2.astype(jnp.bfloat16) + b2_ref[...], 0.0)       # (tb, l2) bf16

    # fc3 (out_features == 1): straightforward (tb, l2) @ (l2, 1), no transposes.
    logits = jnp.dot(h2, w3_ref[...], preferred_element_type=jnp.float32)  # (tb, 1)
    logits = logits + b3_ref[0]                                        # SMEM scalar bias

    # Exact sigmoid in f32 (exp on the EUP; the divide is on a single (tb,1) column).
    o_ref[...] = (1.0 / (1.0 + jnp.exp(-logits))).astype(o_ref.dtype)


def _mlp_block_call(x, w1b, b1b, w2b, b2b, w3b, b3s, *, tb, grid_n, vmem_limit):
    """Run the kernel over the first grid_n*tb rows of x; returns (grid_n*tb, 1) f32."""
    rows = tb * grid_n
    in_dim = x.shape[1]
    l1 = w1b.shape[1]
    l2 = w2b.shape[1]

    cost = pl.CostEstimate(
        flops=2 * rows * (in_dim * l1 + l1 * l2 + l2),
        transcendentals=rows,
        bytes_accessed=rows * in_dim * x.dtype.itemsize + rows * 4
        + (in_dim * l1 + l1 * l2 + l2) * 2 + (l1 + l2 + 1) * 4,
    )

    return pl.pallas_call(
        mlp_kernel,
        out_shape=jax.ShapeDtypeStruct((rows, 1), jnp.float32),
        grid_spec=pltpu.PrefetchScalarGridSpec(
            num_scalar_prefetch=0,
            grid=(grid_n,),
            in_specs=[
                # x tiled along batch; weights/biases resident (constant index_map).
                pl.BlockSpec((tb, in_dim), lambda i: (i, 0)),
                pl.BlockSpec((in_dim, l1), lambda i: (0, 0)),
                pl.BlockSpec((1, l1), lambda i: (0, 0)),
                pl.BlockSpec((l1, l2), lambda i: (0, 0)),
                pl.BlockSpec((1, l2), lambda i: (0, 0)),
                pl.BlockSpec((l2, 1), lambda i: (0, 0)),
                pl.BlockSpec(memory_space=pltpu.MemorySpace.SMEM),  # b3 scalar
            ],
            out_specs=pl.BlockSpec((tb, 1), lambda i: (i, 0)),
        ),
        compiler_params=pltpu.CompilerParams(
            dimension_semantics=("parallel",),
            vmem_limit_bytes=vmem_limit),
        cost_estimate=cost,
    )(x, w1b, b1b, w2b, b2b, w3b, b3s)


def mlp_forward(x, w1, b1, w2, b2, w3, b3, *, block_batch=16384):
    """x: (B, in). w1: (in, l1), b1: (l1,), w2: (l1, l2), b2: (l2,), w3: (l2, 1), b3: (1,)."""
    B, in_dim = x.shape
    l1 = w1.shape[1]
    l2 = w2.shape[1]

    # Tiny operand prep: bf16 weights/biases for MXU/VPU, b3 as an f32 SMEM scalar.
    w1b = w1.astype(jnp.bfloat16)
    b1b = b1.reshape(1, l1).astype(jnp.bfloat16)
    w2b = w2.astype(jnp.bfloat16)
    b2b = b2.reshape(1, l2).astype(jnp.bfloat16)
    w3b = w3.reshape(l2, 1).astype(jnp.bfloat16)
    b3s = b3.reshape(1).astype(jnp.float32)

    # Batch tiling: big tiles amortize per-grid-step overhead; >= 2 grid steps once the
    # batch is large enough so v7x's two TensorCores both run; no jnp.pad of x — tail
    # rows (if any) go through a second call whose block equals the tail's full shape.
    block_batch = max(256, (int(block_batch) // 256) * 256)
    if B <= 512:
        tb, grid_n = B, 1
    else:
        tb = min(block_batch, _round_up(-(-B // 2), 256))
        grid_n = B // tb
    rem = B - tb * grid_n

    # Explicit scoped-VMEM limit: double-buffered x + bf16 h1/h2 (+ f32 matmul results),
    # clamped to [32 MiB, 64 MiB] (64 MiB = v7x physical VMEM).
    per_row = 2 * in_dim * x.dtype.itemsize + 6 * (l1 + l2) + 16
    vmem_limit = int(min(max(tb * per_row + (4 << 20), 32 << 20), 64 << 20))

    out = _mlp_block_call(x, w1b, b1b, w2b, b2b, w3b, b3s,
                          tb=tb, grid_n=grid_n, vmem_limit=vmem_limit)
    if rem:
        x_tail = jax.lax.dynamic_slice_in_dim(x, tb * grid_n, rem, axis=0)
        tail = _mlp_block_call(x_tail, w1b, b1b, w2b, b2b, w3b, b3s,
                               tb=rem, grid_n=1, vmem_limit=vmem_limit)
        out = jnp.concatenate([out, tail], axis=0)
    return out


def init_params(key, input_size, layer1_size, layer2_size):
    """Deterministic PyTorch-Linear-style init: U(-1/sqrt(fan_in), 1/sqrt(fan_in))."""
    ks = jax.random.split(key, 6)

    def linear(kw, kb, fan_in, fan_out):
        bound = 1.0 / jnp.sqrt(fan_in)
        # stored as (in, out) so the forward pass computes x @ W + b
        w = jax.random.uniform(kw, (fan_in, fan_out), jnp.float32, -bound, bound)
        b = jax.random.uniform(kb, (fan_out,), jnp.float32, -bound, bound)
        return w, b

    w1, b1 = linear(ks[0], ks[1], input_size, layer1_size)
    w2, b2 = linear(ks[2], ks[3], layer1_size, layer2_size)
    w3, b3 = linear(ks[4], ks[5], layer2_size, 1)
    return w1, b1, w2, b2, w3, b3


if __name__ == "__main__":
    input_size, layer1_size, layer2_size = 32, 64, 32
    batch = 8

    key = jax.random.PRNGKey(0)
    kx, kp = jax.random.split(key)

    # x produced in bf16 upstream (halves the kernel's dominant HBM stream).
    x = jax.random.normal(kx, (batch, input_size), jnp.float32).astype(jnp.bfloat16)
    params = init_params(kp, input_size, layer1_size, layer2_size)

    out = jax.block_until_ready(mlp_forward(x, *params))

    # Reference in plain f32 JAX (kernel uses bf16 MXU operands -> looser tolerance).
    xf = x.astype(jnp.float32)
    w1, b1, w2, b2, w3, b3 = params
    h = jnp.maximum(xf @ w1 + b1, 0.0)
    h = jnp.maximum(h @ w2 + b2, 0.0)
    ref = 1.0 / (1.0 + jnp.exp(-(h @ w3 + b3)))

    assert out.shape == (batch, 1)
    err = float(jnp.max(jnp.abs(out - ref)))
    assert jnp.allclose(out, ref, atol=2e-2, rtol=2e-2), err

    print("KERNEL_OK")
</pallas_src>

<mosaic_0001>
module attributes {stable_mosaic.version = 11 : i64} {
  func.func @mlp_kernel(%arg0: i32, %arg1: memref<8x32xbf16, #tpu.memory_space<vmem>>, %arg2: memref<32x64xbf16, #tpu.memory_space<vmem>>, %arg3: memref<1x64xbf16, #tpu.memory_space<vmem>>, %arg4: memref<64x32xbf16, #tpu.memory_space<vmem>>, %arg5: memref<1x32xbf16, #tpu.memory_space<vmem>>, %arg6: memref<32x1xbf16, #tpu.memory_space<vmem>>, %arg7: memref<1xf32, #tpu.memory_space<smem>>, %arg8: memref<8x1xf32, #tpu.memory_space<vmem>>) attributes {dimension_semantics = [#tpu.dimension_semantics<parallel>], iteration_bounds = array<i64: 1>, scalar_prefetch = 0 : i64, scratch_operands = 0 : i64, tpu.core_type = #tpu.core_type<tc>, window_params = [{transform_indices = @transform_0, window_bounds = array<i64: 8, 32>}, {pipeline_mode = #tpu.pipeline_mode<synchronous>, transform_indices = @transform_1, window_bounds = array<i64: 32, 64>}, {pipeline_mode = #tpu.pipeline_mode<synchronous>, transform_indices = @transform_2, window_bounds = array<i64: 1, 64>}, {pipeline_mode = #tpu.pipeline_mode<synchronous>, transform_indices = @transform_3, window_bounds = array<i64: 64, 32>}, {pipeline_mode = #tpu.pipeline_mode<synchronous>, transform_indices = @transform_4, window_bounds = array<i64: 1, 32>}, {pipeline_mode = #tpu.pipeline_mode<synchronous>, transform_indices = @transform_5, window_bounds = array<i64: 32, 1>}, {transform_indices = @transform_6, window_bounds = array<i64: 1>}, {transform_indices = @transform_7, window_bounds = array<i64: 8, 1>}]} {
    %c0 = arith.constant 0 : index
    %c0_0 = arith.constant 0 : index
    %0 = vector.load %arg1[%c0, %c0_0] : memref<8x32xbf16, #tpu.memory_space<vmem>>, vector<8x32xbf16>
    %c0_1 = arith.constant 0 : index
    %c0_2 = arith.constant 0 : index
    %1 = vector.load %arg2[%c0_1, %c0_2] : memref<32x64xbf16, #tpu.memory_space<vmem>>, vector<32x64xbf16>
    %cst = arith.constant dense<0.000000e+00> : vector<8x64xf32>
    %2 = tpu.matmul %0, %1, %cst {dimension_numbers = #tpu.dot_dimension_numbers<[1], [0], [0], [1], [0, 0, 1, 1], [], []>} : vector<8x32xbf16>, vector<32x64xbf16>, vector<8x64xf32> -> vector<8x64xf32>
    %3 = arith.truncf %2 : vector<8x64xf32> to vector<8x64xbf16>
    %c0_3 = arith.constant 0 : index
    %c0_4 = arith.constant 0 : index
    %4 = vector.load %arg3[%c0_3, %c0_4] : memref<1x64xbf16, #tpu.memory_space<vmem>>, vector<1x64xbf16>
    %5 = vector.broadcast %4 : vector<1x64xbf16> to vector<8x64xbf16>
    %6 = arith.addf %3, %5 : vector<8x64xbf16>
    %cst_5 = arith.constant 0.000000e+00 : bf16
    %7 = vector.broadcast %cst_5 : bf16 to vector<8x64xbf16>
    %8 = arith.maximumf %6, %7 : vector<8x64xbf16>
    %c0_6 = arith.constant 0 : index
    %c0_7 = arith.constant 0 : index
    %9 = vector.load %arg4[%c0_6, %c0_7] : memref<64x32xbf16, #tpu.memory_space<vmem>>, vector<64x32xbf16>
    %cst_8 = arith.constant dense<0.000000e+00> : vector<8x32xf32>
    %10 = tpu.matmul %8, %9, %cst_8 {dimension_numbers = #tpu.dot_dimension_numbers<[1], [0], [0], [1], [0, 0, 1, 1], [], []>} : vector<8x64xbf16>, vector<64x32xbf16>, vector<8x32xf32> -> vector<8x32xf32>
    %11 = arith.truncf %10 : vector<8x32xf32> to vector<8x32xbf16>
    %c0_9 = arith.constant 0 : index
    %c0_10 = arith.constant 0 : index
    %12 = vector.load %arg5[%c0_9, %c0_10] : memref<1x32xbf16, #tpu.memory_space<vmem>>, vector<1x32xbf16>
    %13 = vector.broadcast %12 : vector<1x32xbf16> to vector<8x32xbf16>
    %14 = arith.addf %11, %13 : vector<8x32xbf16>
    %cst_11 = arith.constant 0.000000e+00 : bf16
    %15 = vector.broadcast %cst_11 : bf16 to vector<8x32xbf16>
    %16 = arith.maximumf %14, %15 : vector<8x32xbf16>
    %c0_12 = arith.constant 0 : index
    %c0_13 = arith.constant 0 : index
    %17 = vector.load %arg6[%c0_12, %c0_13] : memref<32x1xbf16, #tpu.memory_space<vmem>>, vector<32x1xbf16>
    %cst_14 = arith.constant dense<0.000000e+00> : vector<8x1xf32>
    %18 = tpu.matmul %16, %17, %cst_14 {dimension_numbers = #tpu.dot_dimension_numbers<[1], [0], [0], [1], [0, 0, 1, 1], [], []>} : vector<8x32xbf16>, vector<32x1xbf16>, vector<8x1xf32> -> vector<8x1xf32>
    %c0_15 = arith.constant 0 : index
    %19 = memref.load %arg7[%c0_15] : memref<1xf32, #tpu.memory_space<smem>>
    %20 = vector.broadcast %19 : f32 to vector<8x1xf32>
    %21 = arith.addf %18, %20 : vector<8x1xf32>
    %cst_16 = arith.constant 0.000000e+00 : f32
    %22 = vector.broadcast %cst_16 : f32 to vector<8x1xf32>
    %23 = arith.subf %22, %21 : vector<8x1xf32>
    %24 = math.exp %23 : vector<8x1xf32>
    %cst_17 = arith.constant 1.000000e+00 : f32
    %25 = vector.broadcast %cst_17 : f32 to vector<8x1xf32>
    %26 = arith.addf %25, %24 : vector<8x1xf32>
    %cst_18 = arith.constant 1.000000e+00 : f32
    %27 = vector.broadcast %cst_18 : f32 to vector<8x1xf32>
    %28 = arith.divf %27, %26 : vector<8x1xf32>
    %c0_19 = arith.constant 0 : index
    %c0_20 = arith.constant 0 : index
    %29 = vector.load %arg8[%c0_19, %c0_20] : memref<8x1xf32, #tpu.memory_space<vmem>>, vector<8x1xf32>
    tpu.vector_store %arg8[%c0_19, %c0_20], %28 {strides = array<i32>} : memref<8x1xf32, #tpu.memory_space<vmem>>, vector<8x1xf32>,
    return
  }
  func.func @transform_0(%arg0: i32) -> (i32, i32) {
    %c0_i32 = arith.constant 0 : i32
    %c0_i32_0 = arith.constant 0 : i32
    return %arg0, %c0_i32 : i32, i32
  }
  func.func @transform_1(%arg0: i32) -> (i32, i32) {
    %c0_i32 = arith.constant 0 : i32
    %c0_i32_0 = arith.constant 0 : i32
    %c0_i32_1 = arith.constant 0 : i32
    return %c0_i32, %c0_i32_0 : i32, i32
  }
  func.func @transform_2(%arg0: i32) -> (i32, i32) {
    %c0_i32 = arith.constant 0 : i32
    %c0_i32_0 = arith.constant 0 : i32
    %c0_i32_1 = arith.constant 0 : i32
    return %c0_i32, %c0_i32_0 : i32, i32
  }
  func.func @transform_3(%arg0: i32) -> (i32, i32) {
    %c0_i32 = arith.constant 0 : i32
    %c0_i32_0 = arith.constant 0 : i32
    %c0_i32_1 = arith.constant 0 : i32
    return %c0_i32, %c0_i32_0 : i32, i32
  }
  func.func @transform_4(%arg0: i32) -> (i32, i32) {
    %c0_i32 = arith.constant 0 : i32
    %c0_i32_0 = arith.constant 0 : i32
    %c0_i32_1 = arith.constant 0 : i32
    return %c0_i32, %c0_i32_0 : i32, i32
  }
  func.func @transform_5(%arg0: i32) -> (i32, i32) {
    %c0_i32 = arith.constant 0 : i32
    %c0_i32_0 = arith.constant 0 : i32
    %c0_i32_1 = arith.constant 0 : i32
    return %c0_i32, %c0_i32_0 : i32, i32
  }
  func.func @transform_6(%arg0: i32) -> i32 {
    %c0_i32 = arith.constant 0 : i32
    %c0_i32_0 = arith.constant 0 : i32
    return %c0_i32 : i32
  }
  func.func @transform_7(%arg0: i32) -> (i32, i32) {
    %c0_i32 = arith.constant 0 : i32
    %c0_i32_0 = arith.constant 0 : i32
    return %arg0, %c0_i32 : i32, i32
  }
}

</mosaic_0001>

<bundles_post_ra>
// kernel: tpu_custom_call.1
= control target key start
LH: loop header
LB: loop body
LE: loop exit
PB: predicated region body
PF: predicated region fallthrough
CT: control target
= control target key end

     0   :  { %vm45_vm0 = vcmask 261120   ;;  %vm107_vm1 = vcmask 523264   ;;  %vm190_vm5 = vcmask 7168   ;;  %s324_s1 = inlined_call_operand.vmem [shape: bf16[32,64], index: 1, kind: input, shape index: {}]   ;;  %s325_s3 = inlined_call_operand.vmem [shape: bf16[64,32], index: 3, kind: input, shape index: {}]   ;;  %s326_s0 = inlined_call_operand.vmem [shape: bf16[8,32], index: 0, kind: input, shape index: {}]   ;;  %s327_s2 = inlined_call_operand.vmem [shape: bf16[1,64], index: 2, kind: input, shape index: {}]   ;;  %s328_s5 = inlined_call_operand.vmem [shape: bf16[32,1], index: 5, kind: input, shape index: {}]   ;;  %s329_s4 = inlined_call_operand.vmem [shape: bf16[1,32], index: 4, kind: input, shape index: {}]   ;;  %s330_s6 = inlined_call_operand.<no memory space> [shape: f32[1], index: 6, kind: input, shape index: {}]   ;;  %s331_s7 = inlined_call_operand.vmem [shape: f32[8,1], index: 7, kind: output, shape index: {}]  }
   0x1   :  { %v232_v0 = vld [vmem:[%s324_s1 + $0x8] sm:$0xff]  ;;  %v236_v1 = vld [vmem:[%s325_s3 + $0x18] sm:$0xff]  ;;  %v231_v2 = vld [vmem:[%s324_s1] sm:$0xff]  ;;  %v142_v31 = vstv %s330_s6 }
   0x2   :  { %55 = vmatpush.bf16.msra.mxu0 %v232_v0  ;;  %115 = vmatpush.bf16.msra.mxu1 %v236_v1  ;;  %v28_v3 = vld [vmem:[%s326_s0] sm:$0xf]  ;;  %v235_v4 = vld [vmem:[%s325_s3 + $0x10] sm:$0xff]  ;;  %v234_v5 = vld [vmem:[%s325_s3 + $0x8] sm:$0xff] }
   0x3   :  { %v233_v6 = vld [vmem:[%s325_s3] sm:$0xff]  ;;  %v238_v18 = vld [vmem:[%s328_s5 + $0x8] sm:$0xff] }
   0x4   :  { %v63_v7 = vld [vmem:[%s327_s2] sm:$0x1]  ;;  %164 = vmatpush.bf16.msra.mxu2 %v238_v18 }
   0x5   :  { %v65_v8 = vpack.i.b16 %v63_v7, %v63_v7  ;;  %v237_v19 = vld [vmem:[%s328_s5] sm:$0xff] }
   0x6   :  { %56 = vmatpush.bf16.msra.mxu0 %v231_v2  ;;  %116 = vmatpush.bf16.msra.mxu1 %v235_v4  ;;  %v125_v20 = vld [vmem:[%s329_s4] sm:$0x1] }
   0x7   :  { %v67_v9 = vperm.slane %v65_v8, 0  ;;  %v127_v21 = vpack.i.b16 %v125_v20, %v125_v20 }
   0x8   :  { %165 = vmatpush.bf16.msra.mxu2 %v237_v19 }
   0x9   :  { %204 = vmatmul.msk.bf16.vlgmr.msra.gmra.mxu0 %vm45_vm0, %v28_v3  ;;  %v69_v12 = vunpack.c.l.bf16 %v67_v9  ;;  %v129_v22 = vperm.slane %v127_v21, 0 }
   0xa   :  { %117 = vmatpush.bf16.msra.mxu1 %v234_v5 }
   0xb   :  { %v131_v25 = vunpack.c.l.bf16 %v129_v22 }
   0xe   :  { %118 = vmatpush.bf16.msra.mxu1 %v233_v6 }
  0x86   :  { %v58_v10 = vpop.f32.mrf.mxu0 }
  0x87   :  { %v62_v11 = vpack.c.bf16 %v58_v10, %v58_v10 }
  0x89   :  { %v68_v13 = vunpack.c.l.bf16 %v62_v11 }
  0x8b   :  { %v70_v14 = vadd.f32 %v69_v12, %v68_v13 }
  0x8d   :  { %v73_v15 = vmax.f32 %v70_v14, 0.0 }
  0x8e   :  { %v60_v16 = vpop.f32.mrf.mxu0 }
  0x8f   :  { %v74_v17 = vpack.c.bf16 %v73_v15, %v73_v15 }
  0x91   :  { %221 = vmatmul.msk.bf16.vlgmr.msra.gmra.mxu1 %vm107_vm1, %v74_v17 }
 0x10e   :  { %v120_v23 = vpop.f32.mrf.mxu1 }
 0x10f   :  { %v124_v24 = vpack.c.bf16 %v120_v23, %v120_v23 }
 0x111   :  { %v130_v26 = vunpack.c.l.bf16 %v124_v24 }
 0x113   :  { %v132_v27 = vadd.f32 %v131_v25, %v130_v26 }
 0x115   :  { %v135_v28 = vmax.f32 %v132_v27, 0.0 }
 0x116   :  { %v122_v29 = vpop.f32.mrf.mxu1 }
 0x117   :  { %v136_v30 = vpack.c.bf16 %v135_v28, %v135_v28 }
 0x119   :  { %230 = vmatmul.msk.bf16.vlgmr.msra.gmra.mxu2 %vm45_vm0, %v136_v30 }
 0x19c   :  { %v167_v32 = vpop.f32.mrf.mxu2 }
 0x19d   :  { %v168_v33 = vadd.f32 %v167_v32, %v142_v31 }
 0x19f   :  { %v171_v34 = vsub.f32 0.0, %v168_v33 }
 0x1a1   :  { %v172_v35 = vmul.f32 1.442695, %v171_v34 }
 0x1a3   :  { %239 = vpow2.f32 %v172_v35 }
 0x1a4   :  { %v169_v36 = vpop.f32.mrf.mxu2 }
 0x1a9   :  { %v240_v37 = vpop.eup %239 }
 0x1aa   :  { %v174_v38 = vadd.f32 1.0, %v240_v37 }
 0x1ac   :  { %241 = vrcp.f32 %v174_v38  ;;  %v186_v42 = vand.u32 2147483648, %v174_v38  ;;  %v184_v44 = vand.u32 2147483647, %v174_v38  ;;  %vm180_vm3 = vweird.f32 %v174_v38 }
 0x1ae   :  { %v187_v46 = vor.u32 1.1754944e-38, %v186_v42  ;;  %vm185_vm6 = vcmp.eq.f32.partialorder %v184_v44, 8.507059e+37 }
 0x1b2   :  { %v242_v39 = vpop.eup %241 }
 0x1b3   :  { %v176_v40 = vmul.f32 %v242_v39, %v174_v38  ;;  %vm181_vm2 = vweird.f32 %v242_v39 }
 0x1b4   :  { %vm182_vm4 = vmor %vm180_vm3, %vm181_vm2 }
 0x1b5   :  { %v177_v41 = vsub.f32 1.0, %v176_v40 }
 0x1b7   :  { %v178_v43 = vmul.f32 %v242_v39, %v177_v41 }
 0x1b9   :  { %v179_v45 = vadd.f32 %v242_v39, %v178_v43 }
 0x1bb   :  { %v183_v47 = vsel %vm182_vm4, %v242_v39, %v179_v45 }
 0x1bc   :  { %v188_v48 = vsel %vm185_vm6, %v187_v46, %v183_v47 }
 0x1bd   :  { %191 = vst.msk [vmem:[%s331_s7] sm:$0xff] %vm190_vm5, %v188_v48 }

</bundles_post_ra>
